<compile_context>
chip_gen: v6e
topology: v6e:2x2x1
jax: 0.10.0
libtpu: 0.0.40
codegen_flags: <defaults>
</compile_context>

<pallas_src>
import functools

import jax
import jax.numpy as jnp
from jax.experimental import pallas as pl
from jax.experimental.pallas import tpu as pltpu


def _saattn_kernel(b_ref, w_ref, m_ref, x_ref, o_ref, *, C, B_blk, W):
    """One fused batch group per grid step.

    b_ref : (1,)      f32 SMEM  conv bias
    w_ref : (R, 9)    f32 VMEM  per-row (=per-channel) tap weights, t = ky*3+kx
    m_ref : (4, N)    f32 VMEM  boundary masks [dy=-1, dy=+1, dx=-1, dx=+1]
    x_ref : (1, R, N)            input tile, rows r = b_local*C + c, N = H*W
    o_ref : (1, R, N)            gated output tile
    """
    x = x_ref[0].astype(jnp.float32)                               # (R, N)
    N = x.shape[-1]

    # exact (erf-based) GELU, matching torch.nn.GELU() default
    g = 0.5 * x * (1.0 + jax.lax.erf(x * jnp.float32(0.7071067811865476)))

    m = m_ref[...]
    row_up, row_dn = m[0:1, :], m[1:2, :]                          # dy = -1 / +1 valid
    col_l, col_r = m[2:3, :], m[3:4, :]                            # dx = -1 / +1 valid

    w = w_ref[...]                                                 # (R, 9)
    wc = [w[:, t:t + 1] for t in range(9)]                         # hoisted (R,1) columns

    # dy-shifted, row-masked bases (pltpu.roll wraps; masks kill the wrap)
    # roll(g, s)[p] == g[(p - s) mod N]
    g_up = row_up * pltpu.roll(g, W, axis=1)                       # g[p - W], zero on row 0
    g_dn = row_dn * pltpu.roll(g, N - W, axis=1)                   # g[p + W], zero on last row

    # per-dx tap groups in unshifted coordinates: s_dx = sum_dy w[dy,dx] * base_dy
    s_l = g_up * wc[0] + g * wc[3] + g_dn * wc[6]                  # kx = 0 (dx = -1)
    s_c = g_up * wc[1] + g * wc[4] + g_dn * wc[7]                  # kx = 1 (dx =  0)
    s_r = g_up * wc[2] + g * wc[5] + g_dn * wc[8]                  # kx = 2 (dx = +1)

    # shift the dx groups into place, kill the column wrap, accumulate
    acc = (s_c
           + col_l * pltpu.roll(s_l, 1, axis=1)                    # s_l[p - 1]
           + col_r * pltpu.roll(s_r, N - 1, axis=1))               # s_r[p + 1]

    bias = b_ref[0]
    outs = []
    for b in range(B_blk):                                         # segmented channel reduce
        rows = slice(b * C, (b + 1) * C)
        conv_b = jnp.sum(acc[rows], axis=0, keepdims=True)         # (1, N) sublane reduce
        attn_b = jax.nn.sigmoid(conv_b + bias)                     # (1, N)
        outs.append(g[rows] * attn_b)                              # broadcast over channels
    o_ref[0] = jnp.concatenate(outs, axis=0).astype(o_ref.dtype)   # lane-dense full-tile store


def saattn_forward(x, conv_w, conv_b, H, W, b_blk=None):
    """x: (B, N, C) with N == H*W; conv_w: (1, C, 3, 3) OIHW; conv_b: (1,)."""
    B, N, C = x.shape
    assert N == H * W

    # fuse batch elements onto sublanes so B_blk*C fills (up to) 8 sublanes
    if b_blk is None:
        target = max(1, 8 // max(C, 1))
        b_blk = max(d for d in range(1, target + 1) if B % d == 0)
    assert B % b_blk == 0
    Bg = B // b_blk
    R = b_blk * C

    # single channels-first relayout; the (Bg, R, N) regroup is metadata-only
    x_cf = jnp.transpose(x, (0, 2, 1)).reshape(Bg, R, N)

    # tap-major weights replicated per fused batch row: wcols[r, t] = w[t, r % C]
    w_tap = jnp.transpose(conv_w[0], (1, 2, 0)).reshape(9, C)          # (9, C)
    wcols = jnp.tile(jnp.transpose(w_tap), (b_blk, 1)).astype(jnp.float32)  # (R, 9)
    b1 = conv_b.reshape(1).astype(jnp.float32)

    # precomputed boundary masks over the flattened spatial axis (hoisted)
    p = jnp.arange(N)
    row, col = p // W, p % W
    masks = jnp.stack(
        [(row >= 1), (row <= H - 2), (col >= 1), (col <= W - 2)],
        axis=0).astype(jnp.float32)                                    # (4, N)

    kernel = functools.partial(_saattn_kernel, C=C, B_blk=b_blk, W=W)
    out_cf = pl.pallas_call(
        kernel,
        out_shape=jax.ShapeDtypeStruct((Bg, R, N), x.dtype),
        grid=(Bg,),
        in_specs=[
            pl.BlockSpec(memory_space=pltpu.MemorySpace.SMEM),         # bias (1,)
            pl.BlockSpec((R, 9), lambda i: (0, 0)),                    # weights
            pl.BlockSpec((4, N), lambda i: (0, 0)),                    # masks
            pl.BlockSpec((1, R, N), lambda i: (i, 0, 0)),              # x
        ],
        out_specs=pl.BlockSpec((1, R, N), lambda i: (i, 0, 0)),
        compiler_params=pltpu.CompilerParams(
            dimension_semantics=("parallel",)),
    )(b1, wcols, masks, x_cf)

    # back to (B, N, C) as the PyTorch module returns
    return jnp.transpose(out_cf.reshape(B, C, N), (0, 2, 1))


def saattn_reference(x, conv_w, conv_b, H, W):
    """Pure-JAX reference mirroring the PyTorch forward (NCHW conv)."""
    B, N, C = x.shape
    gx = jax.nn.gelu(x, approximate=False)
    img = gx.reshape(B, H, W, C).transpose(0, 3, 1, 2)                 # NCHW
    conv = jax.lax.conv_general_dilated(
        img, conv_w, window_strides=(1, 1), padding="SAME",
        dimension_numbers=("NCHW", "OIHW", "NCHW"))
    conv = conv + conv_b.reshape(1, 1, 1, 1)
    attn = jax.nn.sigmoid(conv)
    out = img * attn                                                   # (B, C, H, W)
    return out.reshape(B, C, H * W).transpose(0, 2, 1)                 # (B, N, C)


if __name__ == "__main__":
    B, H, W, C = 2, 16, 16, 4
    key = jax.random.PRNGKey(0)
    kx, kw, kb = jax.random.split(key, 3)

    x = jax.random.normal(kx, (B, H * W, C), dtype=jnp.float32)

    # deterministic in-script init for nn.Conv2d(C, 1, kernel_size=3) params
    fan_in = C * 3 * 3
    bound = 1.0 / (fan_in ** 0.5)
    conv_w = jax.random.uniform(kw, (1, C, 3, 3), jnp.float32, -bound, bound)
    conv_b = jax.random.uniform(kb, (1,), jnp.float32, -bound, bound)

    out = jax.block_until_ready(saattn_forward(x, conv_w, conv_b, H, W))
    ref = saattn_reference(x, conv_w, conv_b, H, W)

    assert out.shape == (B, H * W, C)
    assert jnp.allclose(out, ref, rtol=1e-5, atol=1e-5), "mismatch vs reference"
    print("KERNEL_OK")
</pallas_src>

<mosaic_0001>
module attributes {stable_mosaic.version = 11 : i64} {
  func.func @_saattn_kernel(%arg0: i32, %arg1: memref<1xf32, #tpu.memory_space<smem>>, %arg2: memref<8x9xf32, #tpu.memory_space<vmem>>, %arg3: memref<4x256xf32, #tpu.memory_space<vmem>>, %arg4: memref<1x8x256xf32, #tpu.memory_space<vmem>>, %arg5: memref<1x8x256xf32, #tpu.memory_space<vmem>>) attributes {dimension_semantics = [#tpu.dimension_semantics<parallel>], iteration_bounds = array<i64: 1>, scalar_prefetch = 0 : i64, scratch_operands = 0 : i64, tpu.core_type = #tpu.core_type<tc>, window_params = [{transform_indices = @transform_0, window_bounds = array<i64: 1>}, {pipeline_mode = #tpu.pipeline_mode<synchronous>, transform_indices = @transform_1, window_bounds = array<i64: 8, 9>}, {pipeline_mode = #tpu.pipeline_mode<synchronous>, transform_indices = @transform_2, window_bounds = array<i64: 4, 256>}, {transform_indices = @transform_3, window_bounds = array<i64: 1, 8, 256>}, {transform_indices = @transform_4, window_bounds = array<i64: 1, 8, 256>}]} {
    %c0 = arith.constant 0 : index
    %c0_0 = arith.constant 0 : index
    %c0_1 = arith.constant 0 : index
    %0 = vector.load %arg4[%c0, %c0_0, %c0_1] : memref<1x8x256xf32, #tpu.memory_space<vmem>>, vector<1x8x256xf32>
    %1 = vector.shape_cast %0 : vector<1x8x256xf32> to vector<8x256xf32>
    %cst = arith.constant 5.000000e-01 : f32
    %2 = vector.broadcast %cst : f32 to vector<8x256xf32>
    %3 = arith.mulf %2, %1 : vector<8x256xf32>
    %cst_2 = arith.constant 0.707106769 : f32
    %4 = vector.broadcast %cst_2 : f32 to vector<8x256xf32>
    %5 = arith.mulf %1, %4 : vector<8x256xf32>
    %6 = math.erf %5 : vector<8x256xf32>
    %cst_3 = arith.constant 1.000000e+00 : f32
    %7 = vector.broadcast %cst_3 : f32 to vector<8x256xf32>
    %8 = arith.addf %7, %6 : vector<8x256xf32>
    %9 = arith.mulf %3, %8 : vector<8x256xf32>
    %c0_4 = arith.constant 0 : index
    %c0_5 = arith.constant 0 : index
    %10 = vector.load %arg3[%c0_4, %c0_5] : memref<4x256xf32, #tpu.memory_space<vmem>>, vector<4x256xf32>
    %11 = vector.extract_strided_slice %10 {offsets = [0, 0], sizes = [1, 256], strides = [1, 1]} : vector<4x256xf32> to vector<1x256xf32>
    %12 = vector.extract_strided_slice %10 {offsets = [1, 0], sizes = [1, 256], strides = [1, 1]} : vector<4x256xf32> to vector<1x256xf32>
    %13 = vector.extract_strided_slice %10 {offsets = [2, 0], sizes = [1, 256], strides = [1, 1]} : vector<4x256xf32> to vector<1x256xf32>
    %14 = vector.extract_strided_slice %10 {offsets = [3, 0], sizes = [1, 256], strides = [1, 1]} : vector<4x256xf32> to vector<1x256xf32>
    %c0_6 = arith.constant 0 : index
    %c0_7 = arith.constant 0 : index
    %15 = vector.load %arg2[%c0_6, %c0_7] : memref<8x9xf32, #tpu.memory_space<vmem>>, vector<8x9xf32>
    %16 = vector.extract_strided_slice %15 {offsets = [0, 0], sizes = [8, 1], strides = [1, 1]} : vector<8x9xf32> to vector<8x1xf32>
    %17 = vector.extract_strided_slice %15 {offsets = [0, 1], sizes = [8, 1], strides = [1, 1]} : vector<8x9xf32> to vector<8x1xf32>
    %18 = vector.extract_strided_slice %15 {offsets = [0, 2], sizes = [8, 1], strides = [1, 1]} : vector<8x9xf32> to vector<8x1xf32>
    %19 = vector.extract_strided_slice %15 {offsets = [0, 3], sizes = [8, 1], strides = [1, 1]} : vector<8x9xf32> to vector<8x1xf32>
    %20 = vector.extract_strided_slice %15 {offsets = [0, 4], sizes = [8, 1], strides = [1, 1]} : vector<8x9xf32> to vector<8x1xf32>
    %21 = vector.extract_strided_slice %15 {offsets = [0, 5], sizes = [8, 1], strides = [1, 1]} : vector<8x9xf32> to vector<8x1xf32>
    %22 = vector.extract_strided_slice %15 {offsets = [0, 6], sizes = [8, 1], strides = [1, 1]} : vector<8x9xf32> to vector<8x1xf32>
    %23 = vector.extract_strided_slice %15 {offsets = [0, 7], sizes = [8, 1], strides = [1, 1]} : vector<8x9xf32> to vector<8x1xf32>
    %24 = vector.extract_strided_slice %15 {offsets = [0, 8], sizes = [8, 1], strides = [1, 1]} : vector<8x9xf32> to vector<8x1xf32>
    %c16_i32 = arith.constant 16 : i32
    %25 = tpu.dynamic_rotate %9 by %c16_i32 dim 1 : vector<8x256xf32>, i32 -> vector<8x256xf32>
    %26 = vector.broadcast %11 : vector<1x256xf32> to vector<8x256xf32>
    %27 = arith.mulf %26, %25 : vector<8x256xf32>
    %c240_i32 = arith.constant 240 : i32
    %28 = tpu.dynamic_rotate %9 by %c240_i32 dim 1 : vector<8x256xf32>, i32 -> vector<8x256xf32>
    %29 = vector.broadcast %12 : vector<1x256xf32> to vector<8x256xf32>
    %30 = arith.mulf %29, %28 : vector<8x256xf32>
    %31 = vector.broadcast %16 : vector<8x1xf32> to vector<8x256xf32>
    %32 = arith.mulf %27, %31 : vector<8x256xf32>
    %33 = vector.broadcast %19 : vector<8x1xf32> to vector<8x256xf32>
    %34 = arith.mulf %9, %33 : vector<8x256xf32>
    %35 = arith.addf %32, %34 : vector<8x256xf32>
    %36 = vector.broadcast %22 : vector<8x1xf32> to vector<8x256xf32>
    %37 = arith.mulf %30, %36 : vector<8x256xf32>
    %38 = arith.addf %35, %37 : vector<8x256xf32>
    %39 = vector.broadcast %17 : vector<8x1xf32> to vector<8x256xf32>
    %40 = arith.mulf %27, %39 : vector<8x256xf32>
    %41 = vector.broadcast %20 : vector<8x1xf32> to vector<8x256xf32>
    %42 = arith.mulf %9, %41 : vector<8x256xf32>
    %43 = arith.addf %40, %42 : vector<8x256xf32>
    %44 = vector.broadcast %23 : vector<8x1xf32> to vector<8x256xf32>
    %45 = arith.mulf %30, %44 : vector<8x256xf32>
    %46 = arith.addf %43, %45 : vector<8x256xf32>
    %47 = vector.broadcast %18 : vector<8x1xf32> to vector<8x256xf32>
    %48 = arith.mulf %27, %47 : vector<8x256xf32>
    %49 = vector.broadcast %21 : vector<8x1xf32> to vector<8x256xf32>
    %50 = arith.mulf %9, %49 : vector<8x256xf32>
    %51 = arith.addf %48, %50 : vector<8x256xf32>
    %52 = vector.broadcast %24 : vector<8x1xf32> to vector<8x256xf32>
    %53 = arith.mulf %30, %52 : vector<8x256xf32>
    %54 = arith.addf %51, %53 : vector<8x256xf32>
    %c1_i32 = arith.constant 1 : i32
    %55 = tpu.dynamic_rotate %38 by %c1_i32 dim 1 : vector<8x256xf32>, i32 -> vector<8x256xf32>
    %56 = vector.broadcast %13 : vector<1x256xf32> to vector<8x256xf32>
    %57 = arith.mulf %56, %55 : vector<8x256xf32>
    %58 = arith.addf %46, %57 : vector<8x256xf32>
    %c255_i32 = arith.constant 255 : i32
    %59 = tpu.dynamic_rotate %54 by %c255_i32 dim 1 : vector<8x256xf32>, i32 -> vector<8x256xf32>
    %60 = vector.broadcast %14 : vector<1x256xf32> to vector<8x256xf32>
    %61 = arith.mulf %60, %59 : vector<8x256xf32>
    %62 = arith.addf %58, %61 : vector<8x256xf32>
    %c0_8 = arith.constant 0 : index
    %63 = memref.load %arg1[%c0_8] : memref<1xf32, #tpu.memory_space<smem>>
    %64 = vector.extract_strided_slice %62 {offsets = [0, 0], sizes = [4, 256], strides = [1, 1]} : vector<8x256xf32> to vector<4x256xf32>
    %cst_9 = arith.constant dense<0.000000e+00> : vector<256xf32>
    %65 = vector.multi_reduction <add>, %64, %cst_9 [0] : vector<4x256xf32> to vector<256xf32>
    %66 = vector.shape_cast %65 : vector<256xf32> to vector<1x256xf32>
    %67 = vector.broadcast %63 : f32 to vector<1x256xf32>
    %68 = arith.addf %66, %67 : vector<1x256xf32>
    %69 = arith.negf %68 : vector<1x256xf32>
    %70 = math.exp %69 : vector<1x256xf32>
    %cst_10 = arith.constant 1.000000e+00 : f32
    %71 = vector.broadcast %cst_10 : f32 to vector<1x256xf32>
    %72 = arith.addf %71, %70 : vector<1x256xf32>
    %73 = arith.divf %71, %72 : vector<1x256xf32>
    %74 = vector.extract_strided_slice %9 {offsets = [0, 0], sizes = [4, 256], strides = [1, 1]} : vector<8x256xf32> to vector<4x256xf32>
    %75 = vector.broadcast %73 : vector<1x256xf32> to vector<4x256xf32>
    %76 = arith.mulf %74, %75 : vector<4x256xf32>
    %77 = vector.extract_strided_slice %62 {offsets = [4, 0], sizes = [4, 256], strides = [1, 1]} : vector<8x256xf32> to vector<4x256xf32>
    %cst_11 = arith.constant dense<0.000000e+00> : vector<256xf32>
    %78 = vector.multi_reduction <add>, %77, %cst_11 [0] : vector<4x256xf32> to vector<256xf32>
    %79 = vector.shape_cast %78 : vector<256xf32> to vector<1x256xf32>
    %80 = vector.broadcast %63 : f32 to vector<1x256xf32>
    %81 = arith.addf %79, %80 : vector<1x256xf32>
    %82 = arith.negf %81 : vector<1x256xf32>
    %83 = math.exp %82 : vector<1x256xf32>
    %cst_12 = arith.constant 1.000000e+00 : f32
    %84 = vector.broadcast %cst_12 : f32 to vector<1x256xf32>
    %85 = arith.addf %84, %83 : vector<1x256xf32>
    %86 = arith.divf %84, %85 : vector<1x256xf32>
    %87 = vector.extract_strided_slice %9 {offsets = [4, 0], sizes = [4, 256], strides = [1, 1]} : vector<8x256xf32> to vector<4x256xf32>
    %88 = vector.broadcast %86 : vector<1x256xf32> to vector<4x256xf32>
    %89 = arith.mulf %87, %88 : vector<4x256xf32>
    %90 = tpu.concatenate %76, %89 in 0 : vector<4x256xf32>, vector<4x256xf32> -> vector<8x256xf32>
    %c0_13 = arith.constant 0 : index
    %c0_14 = arith.constant 0 : index
    %c0_15 = arith.constant 0 : index
    %91 = vector.load %arg5[%c0_13, %c0_14, %c0_15] : memref<1x8x256xf32, #tpu.memory_space<vmem>>, vector<1x8x256xf32>
    %92 = vector.shape_cast %91 : vector<1x8x256xf32> to vector<8x256xf32>
    %93 = vector.shape_cast %90 : vector<8x256xf32> to vector<1x8x256xf32>
    tpu.vector_store %arg5[%c0_13, %c0_14, %c0_15], %93 {strides = array<i32>} : memref<1x8x256xf32, #tpu.memory_space<vmem>>, vector<1x8x256xf32>,
    return
  }
  func.func @transform_0(%arg0: i32) -> i32 {
    %c0_i32 = arith.constant 0 : i32
    %c0_i32_0 = arith.constant 0 : i32
    return %c0_i32 : i32
  }
  func.func @transform_1(%arg0: i32) -> (i32, i32) {
    %c0_i32 = arith.constant 0 : i32
    %c0_i32_0 = arith.constant 0 : i32
    %c0_i32_1 = arith.constant 0 : i32
    return %c0_i32, %c0_i32_0 : i32, i32
  }
  func.func @transform_2(%arg0: i32) -> (i32, i32) {
    %c0_i32 = arith.constant 0 : i32
    %c0_i32_0 = arith.constant 0 : i32
    %c0_i32_1 = arith.constant 0 : i32
    return %c0_i32, %c0_i32_0 : i32, i32
  }
  func.func @transform_3(%arg0: i32) -> (i32, i32, i32) {
    %c0_i32 = arith.constant 0 : i32
    %c0_i32_0 = arith.constant 0 : i32
    %c0_i32_1 = arith.constant 0 : i32
    return %arg0, %c0_i32, %c0_i32_0 : i32, i32, i32
  }
  func.func @transform_4(%arg0: i32) -> (i32, i32, i32) {
    %c0_i32 = arith.constant 0 : i32
    %c0_i32_0 = arith.constant 0 : i32
    %c0_i32_1 = arith.constant 0 : i32
    return %arg0, %c0_i32, %c0_i32_0 : i32, i32, i32
  }
}

</mosaic_0001>

<bundles_post_ra>
// kernel: tpu_custom_call.1
= control target key start
LH: loop header
LB: loop body
LE: loop exit
PB: predicated region body
PF: predicated region fallthrough
CT: control target
= control target key end

     0   :  { %10 = vsyncpa [#allocation4], 0  ;;  %s583_s0 = inlined_call_operand.<no memory space> [shape: f32[1], index: 0, kind: input, shape index: {}]   ;;  %s584_s1 = inlined_call_operand.hbm [shape: f32[8,9], index: 1, kind: input, shape index: {}]   ;;  %s585_s2 = inlined_call_operand.hbm [shape: f32[4,256], index: 2, kind: input, shape index: {}]   ;;  %s586_s3 = inlined_call_operand.hbm [shape: f32[1,8,256], index: 3, kind: input, shape index: {}]   ;;  %s587_s4 = inlined_call_operand.hbm [shape: f32[1,8,256], index: 4, kind: output, shape index: {}]  }
   0x1   :  { %11 = vsyncpa [#allocation7], 0 }
   0x2   :  { %12 = vsyncpa [#allocation5], 0  ;;  %s476_s15 = smov [#allocation6]   ;;  %s477_s17 = smov [#allocation3]  }
   0x3   :  { %s31_s16 = sshll.u32 %s476_s15, 4  ;;  %s21_s18 = sshll.u32 %s477_s17, 4  ;;  %s32_s16 = int_to_ptr.vmem [resolvable:$true] %s31_s16  ;;  %s22_s18 = int_to_ptr.vmem [resolvable:$true] %s21_s18 }
   0x4   :  { %s398_s19 = scalar_lea.vmem %s32_s16, 128  ;;  %p403_p1 = scmp.lt.s32.totalorder %s32_s16, %s32_s16 }
   0x5   :  { %p399_p0 = scmp.ne.s32.totalorder %s32_s16, %s398_s19  ;;  %p404_p2 = scmp.lt.s32.totalorder %s398_s19, %s398_s19 }
   0x7   :  { %p405_p3 = por %p404_p2, %p403_p1 }
   0x9   :  { %p406_p4 = pnand %p405_p3, %p399_p0 }
   0xb   :  { %409 = shalt.err (!%p406_p4)
}
   0xc   :  { %34 = dma.hbm_to_vmem [thread:$0]  %s585_s2, 128, %s32_s16, [#allocation7]  }
   0xd   :  { %s418_s22 = scalar_lea.vmem %s22_s18, 128  ;;  %p423_p6 = scmp.lt.s32.totalorder %s22_s18, %s22_s18 }
   0xe   :  { %p419_p5 = scmp.ne.s32.totalorder %s22_s18, %s418_s22  ;;  %p424_p7 = scmp.lt.s32.totalorder %s418_s22, %s418_s22 }
  0x10   :  { %p425_p8 = por %p424_p7, %p423_p6 }
  0x12   :  { %p426_p9 = pnand %p425_p8, %p419_p5 }
  0x14   :  { %429 = shalt.err (!%p426_p9)
}
  0x15   :  { %24 = dma.hbm_to_vmem [thread:$0]  %s584_s1, 128, %s22_s18, [#allocation4]  }
  0x16   :  { %s478_s25 = smov [#allocation8]  }
  0x17   :  { %s41_s26 = sshll.u32 %s478_s25, 4  ;;  %s42_s26 = int_to_ptr.vmem [resolvable:$true] %s41_s26 }
  0x18   :  { %s438_s27 = scalar_lea.vmem %s42_s26, 256  ;;  %p443_p11 = scmp.lt.s32.totalorder %s42_s26, %s42_s26 }
  0x19   :  { %p439_p10 = scmp.ne.s32.totalorder %s42_s26, %s438_s27  ;;  %p444_p12 = scmp.lt.s32.totalorder %s438_s27, %s438_s27 }
  0x1b   :  { %p445_p13 = por %p444_p12, %p443_p11 }
  0x1d   :  { %p446_p0 = pnand %p445_p13, %p439_p10 }
  0x1f   :  { %449 = shalt.err (!%p446_p0)
}
  0x20   :  { %44 = dma.hbm_to_vmem [thread:$0]  %s586_s3, 256, %s42_s26, [#allocation7]  }
  0x21   :  { %470 = dma.done.wait [#allocation4], 128  }
  0x22   :  { %471 = vsyncadd [#allocation4], 4294967168 }
  0x23   :  { %472 = dma.done.wait [#allocation7], 384  }
  0x24   :  { %473 = vsyncadd [#allocation7], 4294966912  ;;  %v479_v0 = vmov 6   ;;  %v480_v1 = vmov 0   ;;  %v67_v2 = vld [vmem:[#allocation3] sm:$0xff]  ;;  %v55_v3 = vld [vmem:[#allocation8 + $0x8] sm:$0xff]  ;;  %v72_v22 = vlaneseq }
  0x25   :  { %362 = vset.pattern.permute.xlu1 %v479_v0  ;;  %360 = vset.pattern.permute.xlu0 %v480_v1  ;;  %v54_v4 = vld [vmem:[#allocation8] sm:$0xff]  ;;  %v59_v5 = vmul.f32 0.70710677, %v55_v3  ;;  %v481_v7 = vmov 5   ;;  %v482_v8 = vmov 3   ;;  %v483_v9 = vmov 2  }
  0x26   :  { %141 = vperm.xlu1 %362, %v67_v2   ;;  %127 = vperm.xlu0 %360, %v67_v2   ;;  %v58_v6 = vmul.f32 0.70710677, %v54_v4  ;;  %v484_v10 = vmov 8   ;;  %v57_v11 = vmul.f32 0.5, %v55_v3  ;;  %v485_v12 = vmov 1   ;;  %s486_s1 = smov 112  }
  0x27   :  { %370 = verf.f32 %v59_v5  ;;  %v56_v14 = vmul.f32 0.5, %v54_v4  ;;  %s487_s3 = smov 16   ;;  %v488_v20 = vmov 4   ;;  %v489_v21 = vmov 7   ;;  %v539_v30 = vld [vmem:[#allocation6] sm:$0xff]  ;;  %s490_s29 = smov 1  }
  0x28   :  { %372 = verf.f32 %v58_v6  ;;  %v535_v25 = vshrl.u32 %v72_v22, 7  ;;  %v541_v31 = vand.u32 127, %v72_v22  ;;  %s491_s30 = smov 127   ;;  %vm251_vm4 = vcmask 1043456  }
  0x2a   :  { %364 = vset.pattern.permute.xlu1 %v481_v7  ;;  %361 = vset.pattern.permute.xlu0 %v482_v8  ;;  %v80_v28 = vsub.s32 0, %v535_v25  ;;  %v84_v29 = vsub.s32 4, %v535_v25  ;;  %v107_v34 = vsub.s32 1, %v535_v25  ;;  %v111_v35 = vsub.s32 5, %v535_v25 }
  0x2b   :  { %177 = vperm.xlu1 %364, %v67_v2   ;;  %133 = vperm.xlu0 %361, %v67_v2   ;;  %vm74_vm0 = vcmp.lt.s32.totalorder %v541_v31, 16  ;;  %vm102_vm1 = vcmp.lt.s32.totalorder %v541_v31, 112  ;;  %vm196_vm2 = vcmp.lt.s32.totalorder %v541_v31, 1  ;;  %vm225_vm3 = vcmp.lt.s32.totalorder %v541_v31, 127 }
  0x2c   :  { %v81_v32 = vrot.slane %v539_v30, %v80_v28  ;;  %v85_v33 = vrot.slane %v539_v30, %v84_v29  ;;  %v108_v40 = vrot.slane %v539_v30, %v107_v34  ;;  %v112_v41 = vrot.slane %v539_v30, %v111_v35 }
  0x2d   :  { %v205_v29 = vsub.s32 6, %v535_v25  ;;  %v234_v35 = vsub.s32 7, %v535_v25 }
  0x2e   :  { %v91_v38 = vrot.slane %v81_v32, %v80_v28  ;;  %v95_v39 = vrot.slane %v85_v33, %v80_v28  ;;  %v118_v48 = vrot.slane %v108_v40, %v107_v34  ;;  %v122_v49 = vrot.slane %v112_v41, %v107_v34 }
  0x2f   :  { %363 = vset.pattern.permute.xlu0 %v483_v9  ;;  %365 = vset.pattern.permute.xlu1 %v484_v10  ;;  %v201_v28 = vsub.s32 2, %v535_v25  ;;  %v206_v33 = vrot.slane %v539_v30, %v205_v29  ;;  %v230_v34 = vsub.s32 3, %v535_v25  ;;  %v235_v41 = vrot.slane %v539_v30, %v234_v35 }
  0x30   :  { %171 = vperm.xlu0 %363, %v67_v2  }
  0x31   :  { %v202_v32 = vrot.slane %v539_v30, %v201_v28  ;;  %v231_v40 = vrot.slane %v539_v30, %v230_v34 }
  0x34   :  { %366 = vset.pattern.permute.xlu0 %v485_v12  ;;  %v371_v13 = vpop.eup %370 }
  0x35   :  { %v373_v15 = vpop.eup %372  ;;  %v63_v16 = vadd.f32 1.0, %v371_v13 }
  0x36   :  { %v62_v17 = vadd.f32 1.0, %v373_v15 }
  0x37   :  { %v527_v18 = vmul.f32 %v63_v16, %v57_v11 }
  0x38   :  { %v529_v19 = vmul.f32 %v62_v17, %v56_v14 }
  0x39   :  { %100 = vrot.lane.b32.xlu0 %v527_v18, %s486_s1 }
  0x3a   :  { %68 = vrot.lane.b32.xlu1 %v529_v19, %s487_s3 }
  0x3d   :  { %149 = vperm.xlu0 %366, %v67_v2  }
  0x3e   :  { %70 = vrot.lane.b32.xlu1 %v527_v18, %s487_s3 }
  0x41   :  { %369 = vset.pattern.permute.xlu0 %v484_v10 }
  0x42   :  { %98 = vrot.lane.b32.xlu1 %v529_v19, %s486_s1 }
  0x46   :  { %185 = vperm.xlu1 %365, %v67_v2  }
  0x4a   :  { %367 = vset.pattern.permute.xlu1 %v488_v20 }
  0x4b   :  { %155 = vperm.xlu1 %367, %v67_v2  }
  0x4f   :  { %368 = vset.pattern.permute.xlu1 %v489_v21 }
  0x50   :  { %163 = vperm.xlu1 %368, %v67_v2  }
  0xa1   :  { %v142_v23 = vpop.permute.xlu1 %141  ;;  %v128_v24 = vpop.permute.xlu0 %127 }
  0xa6   :  { %v178_v26 = vpop.permute.xlu1 %177  ;;  %v134_v27 = vpop.permute.xlu0 %133 }
  0xa7   :  { %v136_v55 = vmul.f32 %v134_v27, %v529_v19  ;;  %v137_v56 = vmul.f32 %v134_v27, %v527_v18  ;;  %v180_v3 = vmul.f32 %v178_v26, %v529_v19  ;;  %v181_v4 = vmul.f32 %v178_v26, %v527_v18 }
  0xab   :  { %v172_v37 = vpop.permute.xlu0 %171 }
  0xac   :  { %v69_v36 = vpop.permute.xlu1 %68 }
  0xaf   :  { %v101_v47 = vpop.permute.xlu0 %100 }
  0xb0   :  { %v71_v42 = vpop.permute.xlu1 %70 }
  0xb1   :  { %v75_v43 = vsel %vm74_vm0, %v69_v36, %v71_v42  ;;  %v76_v44 = vsel %vm74_vm0, %v71_v42, %v69_v36 }
  0xb2   :  { %v96_v45 = vmul.f32 %v91_v38, %v76_v44  ;;  %v97_v46 = vmul.f32 %v95_v39, %v75_v43  ;;  %v212_v38 = vrot.slane %v202_v32, %v201_v28  ;;  %v216_v39 = vrot.slane %v206_v33, %v201_v28 }
  0xb4   :  { %v130_v50 = vmul.f32 %v128_v24, %v96_v45  ;;  %v131_v51 = vmul.f32 %v128_v24, %v97_v46  ;;  %v99_v52 = vpop.permute.xlu1 %98  ;;  %v174_v1 = vmul.f32 %v172_v37, %v96_v45  ;;  %v175_v2 = vmul.f32 %v172_v37, %v97_v46 }
  0xb5   :  { %v103_v53 = vsel %vm102_vm1, %v99_v52, %v101_v47  ;;  %v104_v54 = vsel %vm102_vm1, %v101_v47, %v99_v52  ;;  %v245_v47 = vrot.slane %v235_v41, %v230_v34 }
  0xb6   :  { %v123_v57 = vmul.f32 %v118_v48, %v103_v53  ;;  %v124_v58 = vmul.f32 %v122_v49, %v104_v54  ;;  %v139_v59 = vadd.f32 %v137_v56, %v131_v51  ;;  %v138_v61 = vadd.f32 %v136_v55, %v130_v50 }
  0xb7   :  { %v183_v6 = vadd.f32 %v181_v4, %v175_v2  ;;  %v182_v7 = vadd.f32 %v180_v3, %v174_v1 }
  0xb8   :  { %v145_v60 = vmul.f32 %v142_v23, %v124_v58  ;;  %v144_v62 = vmul.f32 %v142_v23, %v123_v57  ;;  %v150_v13 = vpop.permute.xlu0 %149 }
  0xb9   :  { %v152_v16 = vmul.f32 %v150_v13, %v96_v45  ;;  %v153_v17 = vmul.f32 %v150_v13, %v97_v46  ;;  %v241_v46 = vrot.slane %v231_v40, %v230_v34 }
  0xba   :  { %v147_v63 = vadd.f32 %v145_v60, %v139_v59  ;;  %v146_v0 = vadd.f32 %v144_v62, %v138_v61 }
  0xbc   :  { %194 = vrot.lane.b32.xlu1 %v147_v63, %s490_s29  ;;  %192 = vrot.lane.b32.xlu0 %v146_v0, %s490_s29 }
  0xc1   :  { %v186_v5 = vpop.permute.xlu1 %185 }
  0xc2   :  { %v188_v8 = vmul.f32 %v186_v5, %v123_v57  ;;  %v189_v9 = vmul.f32 %v186_v5, %v124_v58 }
  0xc4   :  { %v190_v10 = vadd.f32 %v188_v8, %v182_v7  ;;  %v191_v11 = vadd.f32 %v189_v9, %v183_v6 }
  0xc6   :  { %223 = vrot.lane.b32.xlu1 %v191_v11, %s491_s30  ;;  %v156_v12 = vpop.permute.xlu1 %155  ;;  %221 = vrot.lane.b32.xlu0 %v190_v10, %s491_s30 }
  0xc7   :  { %v158_v14 = vmul.f32 %v156_v12, %v529_v19  ;;  %v159_v15 = vmul.f32 %v156_v12, %v527_v18 }
  0xc9   :  { %v160_v21 = vadd.f32 %v158_v14, %v152_v16  ;;  %v161_v22 = vadd.f32 %v159_v15, %v153_v17  ;;  %v266_v15 = vstv %s583_s0  ;;  %s492_s0 = smov [#allocation9]  }
  0xca   :  { %s329_s7 = sshll.u32 %s492_s0, 4  ;;  %s330_s7 = int_to_ptr.vmem [resolvable:$true] %s329_s7 }
  0xcb   :  { %v164_v20 = vpop.permute.xlu1 %163  ;;  %s450_s8 = scalar_lea.vmem %s330_s7, 256  ;;  %p455_p2 = scmp.lt.s32.totalorder %s330_s7, %s330_s7 }
  0xcc   :  { %v166_v23 = vmul.f32 %v164_v20, %v123_v57  ;;  %v167_v24 = vmul.f32 %v164_v20, %v124_v58  ;;  %p451_p1 = scmp.ne.s32.totalorder %s330_s7, %s450_s8  ;;  %p456_p3 = scmp.lt.s32.totalorder %s450_s8, %s450_s8 }
  0xce   :  { %v168_v26 = vadd.f32 %v166_v23, %v160_v21  ;;  %v169_v27 = vadd.f32 %v167_v24, %v161_v22  ;;  %p457_p4 = por %p456_p3, %p455_p2 }
  0xd0   :  { %p458_p5 = pnand %p457_p4, %p451_p1 }
 0x12e   :  { %v195_v36 = vpop.permute.xlu1 %194  ;;  %v193_v37 = vpop.permute.xlu0 %192 }
 0x12f   :  { %v197_v42 = vsel %vm196_vm2, %v193_v37, %v195_v36  ;;  %v198_v43 = vsel %vm196_vm2, %v195_v36, %v193_v37 }
 0x130   :  { %v217_v44 = vmul.f32 %v212_v38, %v198_v43  ;;  %v218_v45 = vmul.f32 %v216_v39, %v197_v42 }
 0x132   :  { %v219_v51 = vadd.f32 %v217_v44, %v168_v26  ;;  %v220_v52 = vadd.f32 %v218_v45, %v169_v27 }
 0x138   :  { %v224_v48 = vpop.permute.xlu1 %223  ;;  %v222_v25 = vpop.permute.xlu0 %221 }
 0x139   :  { %v226_v49 = vsel %vm225_vm3, %v222_v25, %v224_v48  ;;  %v227_v50 = vsel %vm225_vm3, %v224_v48, %v222_v25 }
 0x13a   :  { %v246_v53 = vmul.f32 %v241_v46, %v226_v49  ;;  %v247_v54 = vmul.f32 %v245_v47, %v227_v50 }
 0x13c   :  { %v248_v55 = vadd.f32 %v246_v53, %v219_v51  ;;  %v249_v56 = vadd.f32 %v247_v54, %v220_v52 }
 0x13e   :  { %v252_v30 = vsel %vm251_vm4, %v248_v55, 0.0  ;;  %v259_v57 = vsel %vm251_vm4, %v249_v56, 0.0  ;;  %v285_v31 = vrot.slane %v248_v55, 4  ;;  %v286_v58 = vrot.slane %v249_v56, 4 }
 0x13f   :  { %v253_v59 = vrot.slane %v252_v30, 4  ;;  %v260_v60 = vrot.slane %v259_v57, 4 }
 0x140   :  { %v289_v61 = vsel %vm251_vm4, %v285_v31, 0.0  ;;  %v296_v62 = vsel %vm251_vm4, %v286_v58, 0.0 }
 0x141   :  { %v254_v63 = vadd.f32 %v253_v59, %v252_v30  ;;  %v261_v0 = vadd.f32 %v260_v60, %v259_v57  ;;  %v290_v1 = vrot.slane %v289_v61, 4  ;;  %v297_v2 = vrot.slane %v296_v62, 4 }
 0x143   :  { %v255_v3 = vrot.slane %v254_v63, 2  ;;  %v262_v4 = vrot.slane %v261_v0, 2  ;;  %v291_v5 = vadd.f32 %v290_v1, %v289_v61  ;;  %v298_v6 = vadd.f32 %v297_v2, %v296_v62 }
 0x145   :  { %v256_v7 = vadd.f32 %v255_v3, %v254_v63  ;;  %v263_v8 = vadd.f32 %v262_v4, %v261_v0  ;;  %v292_v9 = vrot.slane %v291_v5, 2  ;;  %v299_v10 = vrot.slane %v298_v6, 2 }
 0x147   :  { %v257_v11 = vrot.slane %v256_v7, 1  ;;  %v264_v12 = vrot.slane %v263_v8, 1  ;;  %v293_v13 = vadd.f32 %v292_v9, %v291_v5  ;;  %v300_v14 = vadd.f32 %v299_v10, %v298_v6 }
 0x149   :  { %v258_v16 = vadd.f32 %v257_v11, %v256_v7  ;;  %v265_v17 = vadd.f32 %v264_v12, %v263_v8  ;;  %v294_v20 = vrot.slane %v293_v13, 1  ;;  %v301_v21 = vrot.slane %v300_v14, 1 }
 0x14b   :  { %v267_v22 = vadd.f32 %v266_v15, %v258_v16  ;;  %v268_v23 = vadd.f32 %v266_v15, %v265_v17  ;;  %v295_v24 = vadd.f32 %v294_v20, %v293_v13  ;;  %v302_v26 = vadd.f32 %v301_v21, %v300_v14 }
 0x14d   :  { %v339_v27 = vmul.f32 -1.442695, %v267_v22  ;;  %v340_v28 = vmul.f32 -1.442695, %v268_v23  ;;  %v303_v29 = vadd.f32 %v295_v24, %v266_v15  ;;  %v304_v32 = vadd.f32 %v302_v26, %v266_v15 }
 0x14f   :  { %374 = vpow2.f32 %v339_v27  ;;  %v341_v33 = vmul.f32 -1.442695, %v303_v29  ;;  %v342_v34 = vmul.f32 -1.442695, %v304_v32 }
 0x150   :  { %376 = vpow2.f32 %v340_v28 }
 0x151   :  { %378 = vpow2.f32 %v341_v33 }
 0x152   :  { %380 = vpow2.f32 %v342_v34 }
 0x15c   :  { %v375_v35 = vpop.eup %374 }
 0x15d   :  { %v377_v36 = vpop.eup %376  ;;  %v275_v37 = vadd.f32 1.0, %v375_v35 }
 0x15e   :  { %v379_v38 = vpop.eup %378  ;;  %v276_v39 = vadd.f32 1.0, %v377_v36 }
 0x15f   :  { %v381_v40 = vpop.eup %380  ;;  %382 = vrcp.f32 %v275_v37  ;;  %v311_v41 = vadd.f32 1.0, %v379_v38 }
 0x160   :  { %384 = vrcp.f32 %v276_v39  ;;  %v312_v42 = vadd.f32 1.0, %v381_v40 }
 0x161   :  { %386 = vrcp.f32 %v311_v41 }
 0x162   :  { %388 = vrcp.f32 %v312_v42 }
 0x16c   :  { %v383_v43 = vpop.eup %382 }
 0x16d   :  { %v385_v44 = vpop.eup %384  ;;  %v281_v47 = vmul.f32 %v383_v43, %v529_v19 }
 0x16e   :  { %v387_v45 = vpop.eup %386  ;;  %v282_v25 = vmul.f32 %v385_v44, %v527_v18 }
 0x16f   :  { %v389_v46 = vpop.eup %388  ;;  %v317_v48 = vmul.f32 %v387_v45, %v529_v19 }
 0x170   :  { %v318_v49 = vmul.f32 %v389_v46, %v527_v18 }
 0x171   :  { %v319_v50 = vsel %vm251_vm4, %v281_v47, %v317_v48 }
 0x172   :  { %v320_v51 = vsel %vm251_vm4, %v282_v25, %v318_v49  ;;  %321 = vst [vmem:[#allocation9] sm:$0xff] %v319_v50 }
 0x173   :  { %322 = vst [vmem:[#allocation9 + $0x8] sm:$0xff] %v320_v51 }
 0x174   :  { %461 = shalt.err (!%p458_p5)
}
 0x175   :  { %332 = dma.vmem_to_hbm [thread:$0]  %s330_s7, 256, %s587_s4, [#allocation5]  }
 0x176   :  { %474 = dma.done.wait [#allocation5], 256  }
 0x177   :  { %475 = vsyncadd [#allocation5], 4294967040 }
 0x178   :  { %336 = vsyncpa [#allocation4], 1 }
 0x179   :  { %337 = vsyncpa [#allocation7], 1 }
 0x17a   :  { %338 = vsyncpa [#allocation5], 1 }

</bundles_post_ra>
